<compile_context>
chip_gen: v5e
topology: v5e:2x2
jax: 0.10.0
libtpu: 0.0.40
codegen_flags: <defaults>
</compile_context>

<pallas_src>
import jax
import jax.numpy as jnp
from jax.experimental import pallas as pl
from jax.experimental.pallas import tpu as pltpu


def _round_up(x, m):
    return (x + m - 1) // m * m


def _lane_dim(d):
    # Blocks whose dims equal the full array dims are always legal; only
    # lane-pad large, non-128-aligned dims.  Tiny dims (in=32, nd=4) stay as-is.
    return d if d <= 128 else _round_up(d, 128)


def _vmem_budget():
    # 128 MiB on v5e/v6e, 64 MiB per TC on v7x; fall back conservatively.
    try:
        cap = int(pltpu.get_tpu_info().vmem_capacity_bytes)
    except Exception:
        cap = 64 * 2**20
    return cap, int(0.75 * cap)


def adversarial_mlp_kernel(x_ref, w1_ref, b1_ref, w2_ref, b2_ref, w3_ref, b3_ref, o_ref):
    # x * 1.0 is the identity; the GRL hook only flips gradients -> forward no-op.
    x = x_ref[...]

    # ad_layer1 + relu1 (+ dropout1 == identity in eval)
    h1 = jnp.dot(x, w1_ref[...], preferred_element_type=jnp.float32) + b1_ref[...]
    h1 = jnp.maximum(h1, 0.0)

    # ad_layer2 + relu2 (+ dropout2 == identity in eval)
    h2 = jnp.dot(h1.astype(w2_ref.dtype), w2_ref[...],
                 preferred_element_type=jnp.float32) + b2_ref[...]
    h2 = jnp.maximum(h2, 0.0)

    # ad_layer3
    y = jnp.dot(h2.astype(w3_ref.dtype), w3_ref[...],
                preferred_element_type=jnp.float32) + b3_ref[...]
    o_ref[...] = y.astype(o_ref.dtype)
    # TODO(synk): training-mode dropout (p=0.5) needs pltpu.prng_seed /
    # pltpu.prng_random_bits keyed on pl.program_id; the gradient-reversal
    # (-coeff) backward needs a custom_vjp wrapper around this call.


def prepare_params(params, compute_dtype=jnp.bfloat16):
    """Pad + cast weights ONCE (hoisted out of the per-call forward path).

    params: w1[in,h], b1[1,h], w2[h,h], b2[1,h], w3[h,nd], b3[1,nd] (f32).
    """
    in_feature, hidden = params["w1"].shape
    ndomains = params["w3"].shape[1]
    in_p, h_p, nd_p = _lane_dim(in_feature), _lane_dim(hidden), _lane_dim(ndomains)
    cd = jnp.dtype(compute_dtype)

    def pad2(a, rows, cols, dtype):
        a = a.astype(dtype)
        if a.shape == (rows, cols):
            return a
        # zero-padding is exact for Linear + ReLU (zero rows/cols contribute 0)
        return jnp.zeros((rows, cols), dtype).at[: a.shape[0], : a.shape[1]].set(a)

    return {
        "w1": pad2(params["w1"], in_p, h_p, cd),
        "b1": pad2(params["b1"], 1, h_p, jnp.float32),
        "w2": pad2(params["w2"], h_p, h_p, cd),
        "b2": pad2(params["b2"], 1, h_p, jnp.float32),
        "w3": pad2(params["w3"], h_p, nd_p, cd),
        "b3": pad2(params["b3"], 1, nd_p, jnp.float32),
        "dims": (in_feature, hidden, ndomains),
        "compute_dtype": cd,
    }


def adversarial_network_forward(x, prepared, *, tile_b=None):
    """x: [B, in_feature] f32.  prepared: output of prepare_params."""
    B, in_feature = x.shape
    in_f, hidden, ndomains = prepared["dims"]
    assert in_feature == in_f, "input feature dim mismatch"
    cd = prepared["compute_dtype"]
    cd_bytes = cd.itemsize

    w1, b1 = prepared["w1"], prepared["b1"]
    w2, b2 = prepared["w2"], prepared["b2"]
    w3, b3 = prepared["w3"], prepared["b3"]
    in_p, h_p = w1.shape
    nd_p = w3.shape[1]

    # --- VMEM accounting (Pallas double-buffers every input, including the
    # constant-index weights, so count them twice) -----------------------------
    weights_bytes = (w1.size + w2.size + w3.size) * cd_bytes \
        + (b1.size + b2.size + b3.size) * 4
    resident_bytes = 2 * weights_bytes
    per_row_bytes = 2 * in_p * cd_bytes + 2 * nd_p * 4 + 2 * h_p * 4  # x(2buf)+out(2buf)+h1/h2
    vmem_cap, budget = _vmem_budget()

    min_tile = 16 if cd_bytes == 2 else 8  # packed bf16 vreg = 16 sublanes
    if tile_b is None:
        avail = max(budget - resident_bytes, per_row_bytes * min_tile)
        tile_b = min(avail // max(per_row_bytes, 1), 2048)
        # Keep >=2 grid steps for mid/large batches so the "parallel" batch axis
        # can shard across both v7x TensorCores (harmless on v5e/v6e).
        if B >= 512:
            tile_b = min(tile_b, _round_up(-(-B // 2), 256))
    tile_b = int(tile_b)
    # MXU / packing friendly rounding.
    if tile_b >= 256:
        tile_b = (tile_b // 256) * 256
    elif tile_b >= 128:
        tile_b = 128
    else:
        tile_b = max(min_tile, (tile_b // min_tile) * min_tile)
    tile_b = min(tile_b, _round_up(B, min_tile))  # don't over-pad tiny batches

    B_p = _round_up(B, tile_b)
    num_tiles = B_p // tile_b
    # TODO(synk): if resident_bytes alone exceeds the VMEM budget (very large
    # hidden), fall back to tiling the hidden/K dims instead of shrinking tile_b.

    # --- input: cast (and pad only when actually needed) ----------------------
    if B_p != B or in_p != in_feature:
        x_p = jnp.zeros((B_p, in_p), cd).at[:B, :in_feature].set(x.astype(cd))
    else:
        x_p = x.astype(cd)

    vmem_needed = (2 * tile_b * in_p * cd_bytes      # double-buffered x tile
                   + 2 * tile_b * nd_p * 4           # double-buffered out tile
                   + resident_bytes                  # 2x-buffered weights/biases
                   + 2 * tile_b * h_p * 4)           # h1/h2 f32 intermediates
    vmem_limit = int(min(int(0.9 * vmem_cap), max(2 * vmem_needed, 32 * 2**20)))

    # --- advisory cost (padded shapes, compute-dtype byte widths) -------------
    flops = 2 * B_p * (in_p * h_p + h_p * h_p + h_p * nd_p)
    bytes_accessed = (cd_bytes * (B_p * in_p + in_p * h_p + h_p * h_p + h_p * nd_p)
                      + 4 * (2 * h_p + nd_p)
                      + 4 * B_p * nd_p)

    const2 = lambda i: (0, 0)
    row_tile = lambda i: (i, 0)

    out_p = pl.pallas_call(
        adversarial_mlp_kernel,
        out_shape=jax.ShapeDtypeStruct((B_p, nd_p), x.dtype),
        grid=(num_tiles,),
        in_specs=[
            pl.BlockSpec((tile_b, in_p), row_tile),   # x: tiled over batch
            pl.BlockSpec((in_p, h_p), const2),        # w1: VMEM-resident
            pl.BlockSpec((1, h_p), const2),           # b1
            pl.BlockSpec((h_p, h_p), const2),         # w2
            pl.BlockSpec((1, h_p), const2),           # b2
            pl.BlockSpec((h_p, nd_p), const2),        # w3
            pl.BlockSpec((1, nd_p), const2),          # b3
        ],
        out_specs=pl.BlockSpec((tile_b, nd_p), row_tile),
        compiler_params=pltpu.CompilerParams(
            dimension_semantics=("parallel",),        # megacore sharding on v7x
            vmem_limit_bytes=vmem_limit,
        ),
        cost_estimate=pl.CostEstimate(
            flops=flops, transcendentals=0, bytes_accessed=bytes_accessed),
    )(x_p, w1, b1, w2, b2, w3, b3)

    if B_p != B or nd_p != ndomains:
        return out_p[:B, :ndomains]
    return out_p


def init_params(key, in_feature, hidden_size, ndomains):
    """Mimics init_weights: xavier_normal_ for Linear weights, zero biases."""
    k1, k2, k3 = jax.random.split(key, 3)

    def xavier_normal(k, fan_in, fan_out):
        std = (2.0 / (fan_in + fan_out)) ** 0.5
        # stored as [in, out] (transpose of PyTorch [out, in]); distribution is symmetric.
        return std * jax.random.normal(k, (fan_in, fan_out), dtype=jnp.float32)

    return {
        "w1": xavier_normal(k1, in_feature, hidden_size),
        "b1": jnp.zeros((1, hidden_size), jnp.float32),
        "w2": xavier_normal(k2, hidden_size, hidden_size),
        "b2": jnp.zeros((1, hidden_size), jnp.float32),
        "w3": xavier_normal(k3, hidden_size, ndomains),
        "b3": jnp.zeros((1, ndomains), jnp.float32),
    }


if __name__ == "__main__":
    in_feature, hidden_size, ndomains = 32, 32, 4
    batch = 8

    key = jax.random.PRNGKey(0)
    kx, kp = jax.random.split(key)
    x = jax.random.normal(kx, (batch, in_feature), dtype=jnp.float32)
    params = init_params(kp, in_feature, hidden_size, ndomains)

    # plain-JAX reference (eval mode: dropout = identity, GRL = forward no-op)
    h1 = jnp.maximum(x @ params["w1"] + params["b1"], 0.0)
    h2 = jnp.maximum(h1 @ params["w2"] + params["b2"], 0.0)
    y_ref = h2 @ params["w3"] + params["b3"]

    # f32 compute path: tight numerical check
    prep_f32 = prepare_params(params, compute_dtype=jnp.float32)
    y32 = adversarial_network_forward(x, prep_f32)
    jax.block_until_ready(y32)
    assert y32.shape == (batch, ndomains)
    assert jnp.allclose(y32, y_ref, atol=1e-5, rtol=1e-5)

    # bf16 default compute path (MXU-native on v5e/v6e/v7x): loosened tolerance
    prep_bf16 = prepare_params(params)  # compute_dtype=bfloat16 by default
    y16 = adversarial_network_forward(x, prep_bf16)
    jax.block_until_ready(y16)
    assert y16.shape == (batch, ndomains)
    assert jnp.allclose(y16, y_ref, atol=1e-1, rtol=5e-2)

    print("KERNEL_OK")
</pallas_src>

<mosaic_0001>
module attributes {stable_mosaic.version = 11 : i64} {
  func.func @adversarial_mlp_kernel(%arg0: i32, %arg1: memref<8x32xf32, #tpu.memory_space<vmem>>, %arg2: memref<32x32xf32, #tpu.memory_space<vmem>>, %arg3: memref<1x32xf32, #tpu.memory_space<vmem>>, %arg4: memref<32x32xf32, #tpu.memory_space<vmem>>, %arg5: memref<1x32xf32, #tpu.memory_space<vmem>>, %arg6: memref<32x4xf32, #tpu.memory_space<vmem>>, %arg7: memref<1x4xf32, #tpu.memory_space<vmem>>, %arg8: memref<8x4xf32, #tpu.memory_space<vmem>>) attributes {dimension_semantics = [#tpu.dimension_semantics<parallel>], iteration_bounds = array<i64: 1>, scalar_prefetch = 0 : i64, scratch_operands = 0 : i64, tpu.core_type = #tpu.core_type<tc>, window_params = [{transform_indices = @transform_0, window_bounds = array<i64: 8, 32>}, {pipeline_mode = #tpu.pipeline_mode<synchronous>, transform_indices = @transform_1, window_bounds = array<i64: 32, 32>}, {pipeline_mode = #tpu.pipeline_mode<synchronous>, transform_indices = @transform_2, window_bounds = array<i64: 1, 32>}, {pipeline_mode = #tpu.pipeline_mode<synchronous>, transform_indices = @transform_3, window_bounds = array<i64: 32, 32>}, {pipeline_mode = #tpu.pipeline_mode<synchronous>, transform_indices = @transform_4, window_bounds = array<i64: 1, 32>}, {pipeline_mode = #tpu.pipeline_mode<synchronous>, transform_indices = @transform_5, window_bounds = array<i64: 32, 4>}, {pipeline_mode = #tpu.pipeline_mode<synchronous>, transform_indices = @transform_6, window_bounds = array<i64: 1, 4>}, {transform_indices = @transform_7, window_bounds = array<i64: 8, 4>}]} {
    %c0 = arith.constant 0 : index
    %c0_0 = arith.constant 0 : index
    %0 = vector.load %arg1[%c0, %c0_0] : memref<8x32xf32, #tpu.memory_space<vmem>>, vector<8x32xf32>
    %c0_1 = arith.constant 0 : index
    %c0_2 = arith.constant 0 : index
    %1 = vector.load %arg2[%c0_1, %c0_2] : memref<32x32xf32, #tpu.memory_space<vmem>>, vector<32x32xf32>
    %cst = arith.constant dense<0.000000e+00> : vector<8x32xf32>
    %2 = tpu.matmul %0, %1, %cst {dimension_numbers = #tpu.dot_dimension_numbers<[1], [0], [0], [1], [0, 0, 1, 1], [], []>} : vector<8x32xf32>, vector<32x32xf32>, vector<8x32xf32> -> vector<8x32xf32>
    %c0_3 = arith.constant 0 : index
    %c0_4 = arith.constant 0 : index
    %3 = vector.load %arg3[%c0_3, %c0_4] : memref<1x32xf32, #tpu.memory_space<vmem>>, vector<1x32xf32>
    %4 = vector.broadcast %3 : vector<1x32xf32> to vector<8x32xf32>
    %5 = arith.addf %2, %4 : vector<8x32xf32>
    %cst_5 = arith.constant 0.000000e+00 : f32
    %6 = vector.broadcast %cst_5 : f32 to vector<8x32xf32>
    %7 = arith.maximumf %5, %6 : vector<8x32xf32>
    %c0_6 = arith.constant 0 : index
    %c0_7 = arith.constant 0 : index
    %8 = vector.load %arg4[%c0_6, %c0_7] : memref<32x32xf32, #tpu.memory_space<vmem>>, vector<32x32xf32>
    %cst_8 = arith.constant dense<0.000000e+00> : vector<8x32xf32>
    %9 = tpu.matmul %7, %8, %cst_8 {dimension_numbers = #tpu.dot_dimension_numbers<[1], [0], [0], [1], [0, 0, 1, 1], [], []>} : vector<8x32xf32>, vector<32x32xf32>, vector<8x32xf32> -> vector<8x32xf32>
    %c0_9 = arith.constant 0 : index
    %c0_10 = arith.constant 0 : index
    %10 = vector.load %arg5[%c0_9, %c0_10] : memref<1x32xf32, #tpu.memory_space<vmem>>, vector<1x32xf32>
    %11 = vector.broadcast %10 : vector<1x32xf32> to vector<8x32xf32>
    %12 = arith.addf %9, %11 : vector<8x32xf32>
    %cst_11 = arith.constant 0.000000e+00 : f32
    %13 = vector.broadcast %cst_11 : f32 to vector<8x32xf32>
    %14 = arith.maximumf %12, %13 : vector<8x32xf32>
    %c0_12 = arith.constant 0 : index
    %c0_13 = arith.constant 0 : index
    %15 = vector.load %arg6[%c0_12, %c0_13] : memref<32x4xf32, #tpu.memory_space<vmem>>, vector<32x4xf32>
    %cst_14 = arith.constant dense<0.000000e+00> : vector<8x4xf32>
    %16 = tpu.matmul %14, %15, %cst_14 {dimension_numbers = #tpu.dot_dimension_numbers<[1], [0], [0], [1], [0, 0, 1, 1], [], []>} : vector<8x32xf32>, vector<32x4xf32>, vector<8x4xf32> -> vector<8x4xf32>
    %c0_15 = arith.constant 0 : index
    %c0_16 = arith.constant 0 : index
    %17 = vector.load %arg7[%c0_15, %c0_16] : memref<1x4xf32, #tpu.memory_space<vmem>>, vector<1x4xf32>
    %18 = vector.broadcast %17 : vector<1x4xf32> to vector<8x4xf32>
    %19 = arith.addf %16, %18 : vector<8x4xf32>
    %c0_17 = arith.constant 0 : index
    %c0_18 = arith.constant 0 : index
    %20 = vector.load %arg8[%c0_17, %c0_18] : memref<8x4xf32, #tpu.memory_space<vmem>>, vector<8x4xf32>
    tpu.vector_store %arg8[%c0_17, %c0_18], %19 {strides = array<i32>} : memref<8x4xf32, #tpu.memory_space<vmem>>, vector<8x4xf32>,
    return
  }
  func.func @transform_0(%arg0: i32) -> (i32, i32) {
    %c0_i32 = arith.constant 0 : i32
    %c0_i32_0 = arith.constant 0 : i32
    return %arg0, %c0_i32 : i32, i32
  }
  func.func @transform_1(%arg0: i32) -> (i32, i32) {
    %c0_i32 = arith.constant 0 : i32
    %c0_i32_0 = arith.constant 0 : i32
    %c0_i32_1 = arith.constant 0 : i32
    return %c0_i32, %c0_i32_0 : i32, i32
  }
  func.func @transform_2(%arg0: i32) -> (i32, i32) {
    %c0_i32 = arith.constant 0 : i32
    %c0_i32_0 = arith.constant 0 : i32
    %c0_i32_1 = arith.constant 0 : i32
    return %c0_i32, %c0_i32_0 : i32, i32
  }
  func.func @transform_3(%arg0: i32) -> (i32, i32) {
    %c0_i32 = arith.constant 0 : i32
    %c0_i32_0 = arith.constant 0 : i32
    %c0_i32_1 = arith.constant 0 : i32
    return %c0_i32, %c0_i32_0 : i32, i32
  }
  func.func @transform_4(%arg0: i32) -> (i32, i32) {
    %c0_i32 = arith.constant 0 : i32
    %c0_i32_0 = arith.constant 0 : i32
    %c0_i32_1 = arith.constant 0 : i32
    return %c0_i32, %c0_i32_0 : i32, i32
  }
  func.func @transform_5(%arg0: i32) -> (i32, i32) {
    %c0_i32 = arith.constant 0 : i32
    %c0_i32_0 = arith.constant 0 : i32
    %c0_i32_1 = arith.constant 0 : i32
    return %c0_i32, %c0_i32_0 : i32, i32
  }
  func.func @transform_6(%arg0: i32) -> (i32, i32) {
    %c0_i32 = arith.constant 0 : i32
    %c0_i32_0 = arith.constant 0 : i32
    %c0_i32_1 = arith.constant 0 : i32
    return %c0_i32, %c0_i32_0 : i32, i32
  }
  func.func @transform_7(%arg0: i32) -> (i32, i32) {
    %c0_i32 = arith.constant 0 : i32
    %c0_i32_0 = arith.constant 0 : i32
    return %arg0, %c0_i32 : i32, i32
  }
}

</mosaic_0001>

<bundles_post_ra>
// kernel: tpu_custom_call.1
= control target key start
LH: loop header
LB: loop body
LE: loop exit
PB: predicated region body
PF: predicated region fallthrough
CT: control target
= control target key end

     0   :  { %12 = vsyncpa [#allocation3], 0  ;;  %s312_s0 = inlined_call_operand.hbm [shape: f32[8,32], index: 0, kind: input, shape index: {}]   ;;  %s313_s1 = inlined_call_operand.vmem [shape: f32[32,32], index: 1, kind: input, shape index: {}]   ;;  %s314_s2 = inlined_call_operand.vmem [shape: f32[1,32], index: 2, kind: input, shape index: {}]   ;;  %s315_s3 = inlined_call_operand.hbm [shape: f32[32,32], index: 3, kind: input, shape index: {}]   ;;  %s316_s4 = inlined_call_operand.vmem [shape: f32[1,32], index: 4, kind: input, shape index: {}]   ;;  %s317_s5 = inlined_call_operand.vmem [shape: f32[32,4], index: 5, kind: input, shape index: {}]   ;;  %s318_s6 = inlined_call_operand.vmem [shape: f32[1,4], index: 6, kind: input, shape index: {}]   ;;  %s319_s7 = inlined_call_operand.vmem [shape: f32[8,4], index: 7, kind: output, shape index: {}]  }
   0x1   :  { %s19_s26 = sshll.u32 %s312_s0, 4  ;;  %s20_s26 = int_to_ptr.hbm [resolvable:$true] %s19_s26 }
   0x2   :  { %13 = vsyncpa [#allocation5], 0  ;;  %s223_s27 = smov [#allocation2]   ;;  %s33_s8 = sshll.u32 %s315_s3, 4  ;;  %s34_s8 = int_to_ptr.hbm [resolvable:$true] %s33_s8 }
   0x3   :  { %s21_s28 = sshll.u32 %s223_s27, 4  ;;  %s224_s9 = smov [#allocation4]   ;;  %s22_s28 = int_to_ptr.vmem [resolvable:$true] %s21_s28 }
   0x4   :  { %24 = dma.hbm_to_vmem [thread:$0]  %s20_s26, 128, %s22_s28, [#allocation3]  }
   0x5   :  { %s35_s10 = sshll.u32 %s224_s9, 4  ;;  %s225_s11 = smov 128   ;;  %s36_s10 = int_to_ptr.vmem [resolvable:$true] %s35_s10 }
   0x6   :  { %s226_s12 = smov 8  }
   0x7   :  { %41 = dma.hbm_to_vmem [thread:$0]  %s34_s8, 512, %s36_s10, [#allocation5], %s225_s11, %s225_s11, %s226_s12  }
   0x8   :  { %219 = dma.done.wait [#allocation3], 128  }
   0x9   :  { %220 = vsyncadd [#allocation3], 4294967168 }
   0xa   :  { %221 = dma.done.wait [#allocation5], 512  }
   0xb   :  { %222 = vsyncadd [#allocation5], 4294966784  ;;  %v60_v0 = vld [vmem:[%s313_s1 + $0x18] sm:$0xff]  ;;  %v59_v1 = vld [vmem:[%s313_s1 + $0x10] sm:$0xff]  ;;  %vm65_vm0 = vcmask 261120   ;;  %vm153_vm1 = vcmask 31744  }
   0xc   :  { %81 = vmatpush.msra.mxu0 %v60_v0  ;;  %v93_v2 = vld [vmem:[#allocation4 + $0x18] sm:$0xff]  ;;  %v58_v3 = vld [vmem:[%s313_s1 + $0x8] sm:$0xff]  ;;  %v92_v6 = vld [vmem:[#allocation4 + $0x10] sm:$0xff] }
   0xd   :  { %113 = vmatpush.msra.mxu1 %v93_v2  ;;  %v57_v4 = vld [vmem:[%s313_s1] sm:$0xff]  ;;  %v91_v7 = vld [vmem:[#allocation4 + $0x8] sm:$0xff]  ;;  %v90_v8 = vld [vmem:[#allocation4] sm:$0xff] }
   0xe   :  { %82 = vmatpush.msra.mxu0 %v59_v1  ;;  %v56_v5 = vld [vmem:[#allocation2] sm:$0xff]  ;;  %v125_v9 = vld [vmem:[%s317_s5 + $0x18] sm:$0xff]  ;;  %v124_v14 = vld [vmem:[%s317_s5 + $0x10] sm:$0xff] }
   0xf   :  { %114 = vmatpush.msra.mxu1 %v92_v6  ;;  %145 = vmatpush.msra.mxu2 %v125_v9  ;;  %v168_v10 = vld [vmem:[%s314_s2] ss:$0 sm:$0xff]  ;;  %v123_v15 = vld [vmem:[%s317_s5 + $0x8] sm:$0xff] }
  0x10   :  { %83 = vmatpush.msra.mxu0 %v58_v3  ;;  %v122_v16 = vld [vmem:[%s317_s5] sm:$0xff] }
  0x11   :  { %115 = vmatpush.msra.mxu1 %v91_v7  ;;  %146 = vmatpush.msra.mxu2 %v124_v14  ;;  %v169_v17 = vld [vmem:[%s316_s4] ss:$0 sm:$0xff] }
  0x12   :  { %84 = vmatpush.msra.mxu0 %v57_v4  ;;  %v170_v21 = vld [vmem:[%s318_s6] ss:$0 sm:$0xff] }
  0x13   :  { %161 = vmatmul.msk.f32.vlgmr.msra.gmra.mxu0 %vm65_vm0, %v56_v5  ;;  %116 = vmatpush.msra.mxu1 %v90_v8 }
  0x14   :  { %147 = vmatpush.msra.mxu2 %v123_v15 }
  0x16   :  { %148 = vmatpush.msra.mxu2 %v122_v16 }
  0x90   :  { %v86_v11 = vpop.f32.mrf.mxu0 }
  0x91   :  { %v87_v12 = vadd.f32 %v168_v10, %v86_v11 }
  0x93   :  { %v89_v13 = vmax.f32 %v87_v12, 0.0 }
  0x95   :  { %162 = vmatmul.msk.f32.vlgmr.msra.gmra.mxu1 %vm65_vm0, %v89_v13 }
 0x112   :  { %v118_v18 = vpop.f32.mrf.mxu1 }
 0x113   :  { %v119_v19 = vadd.f32 %v169_v17, %v118_v18 }
 0x115   :  { %v121_v20 = vmax.f32 %v119_v19, 0.0 }
 0x117   :  { %163 = vmatmul.msk.f32.vlgmr.msra.gmra.mxu2 %vm65_vm0, %v121_v20 }
 0x19a   :  { %v150_v22 = vpop.f32.mrf.mxu2 }
 0x19b   :  { %v151_v23 = vadd.f32 %v170_v21, %v150_v22 }
 0x19d   :  { %154 = vst.msk [vmem:[%s319_s7] sm:$0xff] %vm153_vm1, %v151_v23 }
 0x19e   :  { %159 = vsyncpa [#allocation3], 1 }
 0x19f   :  { %160 = vsyncpa [#allocation5], 1 }

</bundles_post_ra>
